<compile_context>
chip_gen: v5e
topology: v5e:2x2
jax: 0.10.0
libtpu: 0.0.40
codegen_flags: <defaults>
</compile_context>

<pallas_src>
import functools
import math

import jax
import jax.numpy as jnp
from jax.experimental import pallas as pl
from jax.experimental.pallas import tpu as pltpu

_LANES = 128
_SUBLANES = 8
_VMEM_LIMIT_BYTES = 32 * 1024 * 1024      # safe scoped-VMEM budget on v5e/v6e/v7x
_BLOCK_ROWS_Z_HW = 8192                   # 3 streams x 2 bufs x 4 MiB = 24 MiB
_BLOCK_ROWS_Z_EPS = 4096                  # 4 streams x 2 bufs x 2 MiB = 16 MiB
_BLOCK_ROWS_PRIOR = 16384                 # 1 stream  x 2 bufs x 8 MiB = 16 MiB


# --------------------------------------------------------------------------
# In-kernel N(0,1) from the hardware PRNG (Box-Muller on raw 32-bit draws).
# Only relies on prng_seed / prng_random_bits / bitcast (long-standing APIs).
# --------------------------------------------------------------------------
def _normal_from_bits(shape):
    b1 = pltpu.prng_random_bits(shape)
    b2 = pltpu.prng_random_bits(shape)
    if b1.dtype != jnp.uint32:
        b1 = pltpu.bitcast(b1, jnp.uint32)
        b2 = pltpu.bitcast(b2, jnp.uint32)
    # 24-bit-mantissa uniforms: u1 in (0, 1] (safe for log), u2 in [0, 1).
    u1 = ((b1 >> 8).astype(jnp.float32) + 1.0) * (2.0 ** -24)
    u2 = (b2 >> 8).astype(jnp.float32) * (2.0 ** -24)
    r = jnp.sqrt(-2.0 * jnp.log(u1))                  # EUP
    theta = (2.0 * math.pi) * u2
    return r * jnp.cos(theta)                         # EUP + VPU


# --------------------------------------------------------------------------
# Kernels
# --------------------------------------------------------------------------
def _sample_z_hw_kernel(seed_ref, mu_ref, logvar_ref, z_ref):
    """z = mu + exp(logvar/2) * eps, eps drawn in-kernel from the HW PRNG."""
    pltpu.prng_seed(seed_ref[0], pl.program_id(0))    # per-block stream
    eps = _normal_from_bits(z_ref.shape)
    std = jnp.exp(logvar_ref[...].astype(jnp.float32) * 0.5)   # EUP
    z_ref[...] = (mu_ref[...].astype(jnp.float32) + std * eps).astype(z_ref.dtype)


def _sample_z_eps_kernel(mu_ref, logvar_ref, eps_ref, z_ref):
    """Fallback: eps streamed in (backends without HW-PRNG lowering)."""
    std = jnp.exp(logvar_ref[...].astype(jnp.float32) * 0.5)
    z_ref[...] = (mu_ref[...].astype(jnp.float32)
                  + std * eps_ref[...].astype(jnp.float32)).astype(z_ref.dtype)


def _sample_prior_kernel(seed_ref, z_ref):
    """z ~ N(0, I) straight from the HW PRNG (HBM writes only)."""
    pltpu.prng_seed(seed_ref[0], pl.program_id(0))
    z_ref[...] = _normal_from_bits(z_ref.shape).astype(z_ref.dtype)


def _probe_kernel(o_ref):
    pltpu.prng_seed(jnp.int32(12345), jnp.int32(3))
    o_ref[...] = _normal_from_bits(o_ref.shape)


@functools.lru_cache(maxsize=None)
def _hw_prng_available():
    """True iff the hardware PRNG primitives lower on the active backend."""
    try:
        out = pl.pallas_call(
            _probe_kernel,
            out_shape=jax.ShapeDtypeStruct((_SUBLANES, _LANES), jnp.float32),
        )()
        jax.block_until_ready(out)
        return bool(jnp.all(jnp.isfinite(out)))
    except Exception:            # CPU / interpret / jax without these primitives
        return False


# --------------------------------------------------------------------------
# Layout helpers — zero-copy 2-D views, no block-multiple padding.
# --------------------------------------------------------------------------
def _dims_2d(shape):
    total = math.prod(shape) if len(shape) else 1
    if total % _LANES == 0:
        return total // _LANES, _LANES        # lane-dense, full-width stores
    last = shape[-1] if len(shape) else 1
    return total // last, last                # keep last dim; still copy-free


def _view_2d(x):
    n_rows, n_cols = _dims_2d(x.shape)
    return x.reshape(n_rows, n_cols)          # contiguous reshape: no HBM copy


def _round_up(x, m):
    return ((x + m - 1) // m) * m


def _pick_rows_per_block(n_rows, max_rows):
    if n_rows <= 2 * _SUBLANES:
        return n_rows                          # tiny: single full-dim block
    # >= 2 grid steps so both v7x TensorCores get work under "parallel".
    half = _round_up(pl.cdiv(n_rows, 2), _SUBLANES)
    rpb = min(max_rows, half)
    return n_rows if rpb >= n_rows else rpb


# --------------------------------------------------------------------------
# Public wrappers
# --------------------------------------------------------------------------
def sample_z(mu, logvar, seed, *, block_rows=None):
    """Pallas implementation of VAE.sample_z (reparameterization trick)."""
    assert mu.shape == logvar.shape, (mu.shape, logvar.shape)
    orig_shape = mu.shape
    out_dtype = mu.dtype
    n_rows, n_cols = _dims_2d(orig_shape)
    total = n_rows * n_cols

    mu2, lv2 = _view_2d(mu), _view_2d(logvar)

    if _hw_prng_available():
        rpb = _pick_rows_per_block(n_rows, block_rows or _BLOCK_ROWS_Z_HW)
        grid = (pl.cdiv(n_rows, rpb),)
        blk = pl.BlockSpec((rpb, n_cols), lambda i, seed_ref: (i, 0))
        z2 = pl.pallas_call(
            _sample_z_hw_kernel,
            out_shape=jax.ShapeDtypeStruct((n_rows, n_cols), out_dtype),
            grid_spec=pltpu.PrefetchScalarGridSpec(
                num_scalar_prefetch=1,
                grid=grid,
                in_specs=[blk, blk],
                out_specs=blk,
            ),
            compiler_params=pltpu.CompilerParams(
                dimension_semantics=("parallel",),
                vmem_limit_bytes=_VMEM_LIMIT_BYTES,
            ),
            cost_estimate=pl.CostEstimate(
                flops=6 * total, transcendentals=4 * total,
                bytes_accessed=12 * total),
        )(jnp.asarray([seed], dtype=jnp.int32), mu2, lv2)
    else:
        # Fallback: stream eps produced by jax.random.normal (still fused).
        eps2 = _view_2d(
            jax.random.normal(jax.random.PRNGKey(seed), orig_shape, jnp.float32))
        rpb = _pick_rows_per_block(n_rows, block_rows or _BLOCK_ROWS_Z_EPS)
        grid = (pl.cdiv(n_rows, rpb),)
        blk = pl.BlockSpec((rpb, n_cols), lambda i: (i, 0))
        z2 = pl.pallas_call(
            _sample_z_eps_kernel,
            out_shape=jax.ShapeDtypeStruct((n_rows, n_cols), out_dtype),
            grid=grid,
            in_specs=[blk, blk, blk],
            out_specs=blk,
            compiler_params=pltpu.CompilerParams(
                dimension_semantics=("parallel",),
                vmem_limit_bytes=_VMEM_LIMIT_BYTES,
            ),
            cost_estimate=pl.CostEstimate(
                flops=3 * total, transcendentals=total,
                bytes_accessed=16 * total),
        )(mu2, lv2, eps2)

    return z2.reshape(orig_shape)     # sizes match exactly -> free reshape


def sample_z_prior(seed, shape, dtype=jnp.float32, *, block_rows=None):
    """Sample z ~ p(z) = N(0, I)  (VAE.sample_z_prior)."""
    shape = tuple(shape)
    if not _hw_prng_available():
        # No HW-PRNG lowering on this backend: plain XLA RNG (== torch.randn).
        return jax.random.normal(jax.random.PRNGKey(seed), shape, dtype=dtype)

    n_rows, n_cols = _dims_2d(shape)
    total = n_rows * n_cols
    rpb = _pick_rows_per_block(n_rows, block_rows or _BLOCK_ROWS_PRIOR)
    grid = (pl.cdiv(n_rows, rpb),)
    blk = pl.BlockSpec((rpb, n_cols), lambda i, seed_ref: (i, 0))
    z2 = pl.pallas_call(
        _sample_prior_kernel,
        out_shape=jax.ShapeDtypeStruct((n_rows, n_cols), dtype),
        grid_spec=pltpu.PrefetchScalarGridSpec(
            num_scalar_prefetch=1, grid=grid, in_specs=[], out_specs=blk),
        compiler_params=pltpu.CompilerParams(
            dimension_semantics=("parallel",),
            vmem_limit_bytes=_VMEM_LIMIT_BYTES,
        ),
        cost_estimate=pl.CostEstimate(
            flops=5 * total, transcendentals=3 * total,
            bytes_accessed=4 * total),
    )(jnp.asarray([seed], dtype=jnp.int32))
    return z2.reshape(shape)


def sample_c_prior(key, shape, num_labels=2):
    """c ~ Cat(uniform).  Host-side glue (no kernel needed)."""
    # TODO(synk): reference uses undefined self.num_labels; default to 2 (Cat([0.5, 0.5])).
    return jax.random.randint(key, shape, 0, num_labels, dtype=jnp.int32)


def vae_forward(x):
    """Reference VAE.forward has an empty body and returns None."""
    # TODO(synk): recon_loss / kl_loss are documented but never computed in the reference.
    return None


# --------------------------------------------------------------------------
# Self-test
# --------------------------------------------------------------------------
if __name__ == "__main__":
    key = jax.random.PRNGKey(0)
    k_mu, k_lv = jax.random.split(key, 2)

    # Small shapes consistent with the module: batch=4, latent=32.
    B, D = 4, 32
    mu = jax.random.normal(k_mu, (B, D), dtype=jnp.float32)
    logvar = jax.random.normal(k_lv, (B, D), dtype=jnp.float32)

    z = sample_z(mu, logvar, seed=0)
    jax.block_until_ready(z)
    assert z.shape == (B, D)
    assert bool(jnp.all(jnp.isfinite(z)))

    # Determinism: same seed -> identical samples; different seed -> different.
    z_again = sample_z(mu, logvar, seed=0)
    assert bool(jnp.array_equal(z, z_again)), "same seed should reproduce z"
    z_other = sample_z(mu, logvar, seed=1)
    assert not bool(jnp.array_equal(z, z_other)), "different seed should differ"

    # Non-128-multiple shape exercises the (rows, last-dim) layout path.
    z_odd = sample_z(mu[:3, :20], logvar[:3, :20], seed=3)
    jax.block_until_ready(z_odd)
    assert z_odd.shape == (3, 20) and bool(jnp.all(jnp.isfinite(z_odd)))

    # Statistical check on a multi-block grid (small block_rows forces 16 grid
    # steps including a masked partial edge block): recovered
    # eps = (z - mu) * exp(-logvar/2) must be ~ N(0, 1).
    Bs, Ds = 500, 256        # 128000 elems -> lane-dense (1000, 128) view
    kb, kl = jax.random.split(jax.random.PRNGKey(1), 2)
    mu_l = jax.random.normal(kb, (Bs, Ds), dtype=jnp.float32)
    lv_l = jax.random.normal(kl, (Bs, Ds), dtype=jnp.float32) * 0.5
    z_l = sample_z(mu_l, lv_l, seed=42, block_rows=64)
    jax.block_until_ready(z_l)
    eps_rec = (z_l - mu_l) * jnp.exp(-lv_l * 0.5)
    m = float(jnp.mean(eps_rec))
    s = float(jnp.std(eps_rec))
    assert abs(m) < 0.05, f"recovered eps mean off: {m}"
    assert abs(s - 1.0) < 0.05, f"recovered eps std off: {s}"

    # Prior sampling.
    zp = sample_z_prior(seed=7, shape=(B, D))
    jax.block_until_ready(zp)
    assert zp.shape == (B, D)
    assert bool(jnp.all(jnp.isfinite(zp)))

    # Categorical prior glue + no-op forward.
    c = sample_c_prior(jax.random.PRNGKey(2), (B,))
    assert c.shape == (B,)
    assert vae_forward(jnp.zeros((B, D), jnp.float32)) is None

    print("KERNEL_OK")
</pallas_src>

<mosaic_0001>
module attributes {stable_mosaic.version = 11 : i64} {
  func.func @_sample_z_eps_kernel(%arg0: i32, %arg1: memref<1x128xf32, #tpu.memory_space<vmem>>, %arg2: memref<1x128xf32, #tpu.memory_space<vmem>>, %arg3: memref<1x128xf32, #tpu.memory_space<vmem>>, %arg4: memref<1x128xf32, #tpu.memory_space<vmem>>) attributes {dimension_semantics = [#tpu.dimension_semantics<parallel>], iteration_bounds = array<i64: 1>, scalar_prefetch = 0 : i64, scratch_operands = 0 : i64, tpu.core_type = #tpu.core_type<tc>, window_params = [{transform_indices = @transform_0, window_bounds = array<i64: 1, 128>}, {transform_indices = @transform_1, window_bounds = array<i64: 1, 128>}, {transform_indices = @transform_2, window_bounds = array<i64: 1, 128>}, {transform_indices = @transform_3, window_bounds = array<i64: 1, 128>}]} {
    %c0 = arith.constant 0 : index
    %c0_0 = arith.constant 0 : index
    %0 = vector.load %arg2[%c0, %c0_0] : memref<1x128xf32, #tpu.memory_space<vmem>>, vector<1x128xf32>
    %cst = arith.constant 5.000000e-01 : f32
    %1 = vector.broadcast %cst : f32 to vector<1x128xf32>
    %2 = arith.mulf %0, %1 : vector<1x128xf32>
    %3 = math.exp %2 : vector<1x128xf32>
    %c0_1 = arith.constant 0 : index
    %c0_2 = arith.constant 0 : index
    %4 = vector.load %arg1[%c0_1, %c0_2] : memref<1x128xf32, #tpu.memory_space<vmem>>, vector<1x128xf32>
    %c0_3 = arith.constant 0 : index
    %c0_4 = arith.constant 0 : index
    %5 = vector.load %arg3[%c0_3, %c0_4] : memref<1x128xf32, #tpu.memory_space<vmem>>, vector<1x128xf32>
    %6 = arith.mulf %3, %5 : vector<1x128xf32>
    %7 = arith.addf %4, %6 : vector<1x128xf32>
    %c0_5 = arith.constant 0 : index
    %c0_6 = arith.constant 0 : index
    %8 = vector.load %arg4[%c0_5, %c0_6] : memref<1x128xf32, #tpu.memory_space<vmem>>, vector<1x128xf32>
    tpu.vector_store %arg4[%c0_5, %c0_6], %7 {strides = array<i32>} : memref<1x128xf32, #tpu.memory_space<vmem>>, vector<1x128xf32>,
    return
  }
  func.func @transform_0(%arg0: i32) -> (i32, i32) {
    %c0_i32 = arith.constant 0 : i32
    %c0_i32_0 = arith.constant 0 : i32
    return %arg0, %c0_i32 : i32, i32
  }
  func.func @transform_1(%arg0: i32) -> (i32, i32) {
    %c0_i32 = arith.constant 0 : i32
    %c0_i32_0 = arith.constant 0 : i32
    return %arg0, %c0_i32 : i32, i32
  }
  func.func @transform_2(%arg0: i32) -> (i32, i32) {
    %c0_i32 = arith.constant 0 : i32
    %c0_i32_0 = arith.constant 0 : i32
    return %arg0, %c0_i32 : i32, i32
  }
  func.func @transform_3(%arg0: i32) -> (i32, i32) {
    %c0_i32 = arith.constant 0 : i32
    %c0_i32_0 = arith.constant 0 : i32
    return %arg0, %c0_i32 : i32, i32
  }
}

</mosaic_0001>

<bundles_post_ra>
// kernel: tpu_custom_call.1
= control target key start
LH: loop header
LB: loop body
LE: loop exit
PB: predicated region body
PF: predicated region fallthrough
CT: control target
= control target key end

     0   :  { %8 = vsyncpa [#allocation3], 0  ;;  %s188_s0 = inlined_call_operand.hbm [shape: f32[1,128], index: 0, kind: input, shape index: {}]   ;;  %s189_s1 = inlined_call_operand.hbm [shape: f32[1,128], index: 1, kind: input, shape index: {}]   ;;  %s190_s2 = inlined_call_operand.vmem [shape: f32[1,128], index: 2, kind: input, shape index: {}]   ;;  %s191_s3 = inlined_call_operand.hbm [shape: f32[1,128], index: 3, kind: output, shape index: {}]  }
   0x1   :  { %9 = vsyncpa [#allocation6], 0 }
   0x2   :  { %10 = vsyncpa [#allocation4], 0  ;;  %s16_s14 = sshll.u32 %s188_s0, 4  ;;  %s153_s15 = smov [#allocation2]   ;;  %s17_s14 = int_to_ptr.hbm [resolvable:$true] %s16_s14 }
   0x3   :  { %s18_s16 = sshll.u32 %s153_s15, 4  ;;  %s27_s19 = sshll.u32 %s189_s1, 4  ;;  %s19_s16 = int_to_ptr.vmem [resolvable:$true] %s18_s16  ;;  %s28_s19 = int_to_ptr.hbm [resolvable:$true] %s27_s19 }
   0x4   :  { %21 = dma.hbm_to_vmem [thread:$0]  %s17_s14, 16, %s19_s16, [#allocation3]  }
   0x5   :  { %s154_s20 = smov [#allocation5]  }
   0x6   :  { %s29_s21 = sshll.u32 %s154_s20, 4  ;;  %s30_s21 = int_to_ptr.vmem [resolvable:$true] %s29_s21 }
   0x7   :  { %32 = dma.hbm_to_vmem [thread:$0]  %s28_s19, 16, %s30_s21, [#allocation6]  }
   0x8   :  { %147 = dma.done.wait [#allocation3], 16  }
   0x9   :  { %148 = vsyncadd [#allocation3], 4294967280 }
   0xa   :  { %149 = dma.done.wait [#allocation6], 16  }
   0xb   :  { %150 = vsyncadd [#allocation6], 4294967280  ;;  %v43_v0 = vld [vmem:[#allocation5] sm:$0x1]  ;;  %v48_v3 = vld [vmem:[%s190_s2] sm:$0x1] }
   0xc   :  { %v44_v1 = vmul.f32 0.5, %v43_v0  ;;  %v47_v5 = vld [vmem:[#allocation2] sm:$0x1]  ;;  %s155_s1 = smov [#allocation7]   ;;  %s59_s26 = sshll.u32 %s191_s3, 4  ;;  %s60_s26 = int_to_ptr.hbm [resolvable:$true] %s59_s26 }
   0xd   :  { %s57_s23 = sshll.u32 %s155_s1, 4  ;;  %s58_s23 = int_to_ptr.vmem [resolvable:$true] %s57_s23 }
   0xe   :  { %v45_v2 = vmul.f32 1.442695, %v44_v1 }
  0x10   :  { %73 = vpow2.f32 %v45_v2 }
  0x16   :  { %v74_v4 = vpop.eup %73 }
  0x17   :  { %v49_v6 = vmul.f32 %v74_v4, %v48_v3 }
  0x19   :  { %v50_v7 = vadd.f32 %v49_v6, %v47_v5 }
  0x1b   :  { %51 = vst [vmem:[#allocation7] sm:$0x1] %v50_v7 }
  0x1c   :  { %62 = dma.vmem_to_hbm [thread:$0]  %s58_s23, 16, %s60_s26, [#allocation4]  }
  0x1d   :  { %151 = dma.done.wait [#allocation4], 16  }
  0x1e   :  { %152 = vsyncadd [#allocation4], 4294967280 }
  0x1f   :  { %67 = vsyncpa [#allocation3], 1 }
  0x20   :  { %68 = vsyncpa [#allocation6], 1 }
  0x21   :  { %69 = vsyncpa [#allocation4], 1 }

</bundles_post_ra>
